<compile_context>
chip_gen: v7x
topology: tpu7x:2x2x1
jax: 0.10.0
libtpu: 0.0.40
codegen_flags: <defaults>
</compile_context>

<pallas_src>
import jax
import jax.numpy as jnp
from jax.experimental import pallas as pl
from jax.experimental.pallas import tpu as pltpu


def _round_up(x, m):
    return ((x + m - 1) // m) * m


def _choose_tile_rows(B, D, LF, block_b, vmem_budget_bytes):
    """Pick the B-tile size.

    * tiny B -> single tile (grid-step overhead would dominate otherwise);
    * otherwise at least two (an even number of) grid steps so v7x can put
      tiles on both TensorCores;
    * rows are a multiple of 8 (sublanes) and clamped so the double-buffered
      activation + output tiles stay inside the VMEM budget.
    """
    if B <= 16:
        return B
    n_steps = max(2, -(-B // block_b))
    if n_steps % 2:
        n_steps += 1
    tb = _round_up(-(-B // n_steps), 8)
    bytes_per_row = 2 * (D + LF) * 4          # double-buffered x tile + out tile (f32)
    max_rows = max(8, (vmem_budget_bytes // bytes_per_row) // 8 * 8)
    return max(8, min(tb, max_rows, _round_up(B, 8)))


def dir_param_expan(embs, wxor_lut, weight, bias, *, n_src, n_lbs,
                    block_b=1024, matmul_dtype=None,
                    vmem_budget_bytes=40 * 1024 * 1024):
    """Pallas implementation of DirParamExpanModule.forward.

    Returns (B, n_src, n_lbs, n_lbs - 1), identical to the PyTorch module.
    """
    B, _, D = embs.shape
    Lm1 = n_lbs - 1
    F = n_src * Lm1                 # Linear output features
    GL = n_lbs * Lm1                # per-source output group width
    LF = n_src * GL                 # flat output width (= n_src * n_lbs * (n_lbs-1))

    # ---- wrapper-side glue (parameter-sized, done once, no output copies) ----
    x = embs[:, 0, :]                                          # (B, D)
    w_t = weight.T                                             # (D, F)  PyTorch Linear layout
    b_row = bias.reshape(1, F)                                 # (1, F)  resident
    # lut_flat[0, s*GL + j*Lm1 + k] = wxor_lut[s, k, j]: the reference's
    # transpose(-1, -2) is folded into this constant so the kernel's flat
    # column order already matches the module's output layout.
    lut_flat = jnp.transpose(wxor_lut, (0, 2, 1)).reshape(1, LF)

    if matmul_dtype is not None:
        x = x.astype(matmul_dtype)
        w_t = w_t.astype(matmul_dtype)

    tb = _choose_tile_rows(B, D, LF, block_b, vmem_budget_bytes)
    grid = (pl.cdiv(B, tb),)

    # Scoped-VMEM request: double-buffered x/out tiles + resident params
    # (conservatively counted twice) + slack for compiler temporaries.
    est = 2 * tb * (D + LF) * 4 + 2 * (D * F + F + LF) * 4
    vmem_limit = int(min(100 * 1024 * 1024, max(32 * 1024 * 1024, est * 5 // 4)))

    def kernel(x_ref, w_ref, b_ref, lut_ref, o_ref):
        # x_ref:   (tb, D)   first-token embeddings (B tile)
        # w_ref:   (D, F)    Linear weight (transposed), resident
        # b_ref:   (1, F)    Linear bias row, resident
        # lut_ref: (1, LF)   transposed + flattened LUT, resident
        # o_ref:   (tb, LF)  flat lane-dense output slab, column order [s, j, k]
        z = jnp.dot(x_ref[...], w_ref[...], preferred_element_type=jnp.float32)
        scale = jax.nn.sigmoid(z + b_ref[...])                  # (tb, F)  f32, EUP
        # Expand scale along the label axis: output column c = s*GL + j*Lm1 + k
        # must hold scale[:, s*Lm1 + k]. Built from static 2-D lane slices and a
        # single concatenate (no reshape/transpose), then one broadcast multiply
        # by the LUT row and one full-width store.
        pieces = []
        for s in range(n_src):
            blk = scale[:, s * Lm1:(s + 1) * Lm1]               # (tb, Lm1)
            pieces.extend([blk] * n_lbs)
        expanded = pieces[0] if len(pieces) == 1 else jnp.concatenate(pieces, axis=-1)
        o_ref[...] = (expanded * lut_ref[...]).astype(o_ref.dtype)

    out_flat = pl.pallas_call(
        kernel,
        out_shape=jax.ShapeDtypeStruct((B, LF), embs.dtype),
        grid_spec=pltpu.PrefetchScalarGridSpec(
            num_scalar_prefetch=0,
            grid=grid,
            in_specs=[
                pl.BlockSpec((tb, D), lambda i: (i, 0)),        # activations: B-tiled
                pl.BlockSpec((D, F), lambda i: (0, 0)),         # weight: resident
                pl.BlockSpec((1, F), lambda i: (0, 0)),         # bias: resident
                pl.BlockSpec((1, LF), lambda i: (0, 0)),        # LUT: resident
            ],
            out_specs=pl.BlockSpec((tb, LF), lambda i: (i, 0)),
        ),
        compiler_params=pltpu.CompilerParams(
            dimension_semantics=("parallel",),                  # v7x: shard B tiles over TCs
            vmem_limit_bytes=vmem_limit),
    )(x, w_t, b_row, lut_flat)

    # Free row-major view (no transpose, no HBM copy):
    #   column c = s*GL + j*Lm1 + k  ->  (B, n_src, n_lbs, n_lbs-1).
    return out_flat.reshape(B, n_src, n_lbs, Lm1)


def _reference(embs, wxor_lut, weight, bias, n_src):
    """Pure-JAX transcription of the PyTorch forward (for verification)."""
    B = embs.shape[0]
    z = embs[:, 0, :] @ weight.T + bias
    scale = jax.nn.sigmoid(z).reshape(B, n_src, -1)
    pot = scale[..., None] * wxor_lut[None]
    return jnp.swapaxes(pot, -1, -2)


if __name__ == "__main__":
    B, T, D = 2, 8, 32          # batch, max_len_seq, d_emb
    n_src, n_lbs = 4, 5
    F = n_src * (n_lbs - 1)

    key = jax.random.PRNGKey(0)
    k1, k2, k3, k4 = jax.random.split(key, 4)

    embs = jax.random.normal(k1, (B, T, D), dtype=jnp.float32)

    # Deterministic parameter init (Xavier-uniform weight, PyTorch-style bias).
    xav_bound = (6.0 / (F + D)) ** 0.5
    weight = jax.random.uniform(k2, (F, D), minval=-xav_bound, maxval=xav_bound,
                                dtype=jnp.float32)
    b_bound = 1.0 / (D ** 0.5)
    bias = jax.random.uniform(k3, (F,), minval=-b_bound, maxval=b_bound,
                              dtype=jnp.float32)

    # Weighted-xor lookup table: non-negative rows summing to 1.
    lut_raw = jax.random.uniform(k4, (n_src, n_lbs - 1, n_lbs), dtype=jnp.float32)
    wxor_lut = lut_raw / jnp.sum(lut_raw, axis=-1, keepdims=True)

    out = dir_param_expan(embs, wxor_lut, weight, bias, n_src=n_src, n_lbs=n_lbs)
    out = jax.block_until_ready(out)

    ref = _reference(embs, wxor_lut, weight, bias, n_src)
    assert out.shape == (B, n_src, n_lbs, n_lbs - 1), out.shape
    assert jnp.allclose(out, ref, atol=1e-5, rtol=1e-5)

    print("KERNEL_OK")
</pallas_src>

<mosaic_0001>
module attributes {stable_mosaic.version = 11 : i64} {
  func.func @kernel(%arg0: i32, %arg1: memref<2x32xf32, #tpu.memory_space<vmem>>, %arg2: memref<32x16xf32, #tpu.memory_space<vmem>>, %arg3: memref<1x16xf32, #tpu.memory_space<vmem>>, %arg4: memref<1x80xf32, #tpu.memory_space<vmem>>, %arg5: memref<2x80xf32, #tpu.memory_space<vmem>>) attributes {dimension_semantics = [#tpu.dimension_semantics<parallel>], iteration_bounds = array<i64: 1>, scalar_prefetch = 0 : i64, scratch_operands = 0 : i64, tpu.core_type = #tpu.core_type<tc>, window_params = [{transform_indices = @transform_0, window_bounds = array<i64: 2, 32>}, {pipeline_mode = #tpu.pipeline_mode<synchronous>, transform_indices = @transform_1, window_bounds = array<i64: 32, 16>}, {pipeline_mode = #tpu.pipeline_mode<synchronous>, transform_indices = @transform_2, window_bounds = array<i64: 1, 16>}, {pipeline_mode = #tpu.pipeline_mode<synchronous>, transform_indices = @transform_3, window_bounds = array<i64: 1, 80>}, {transform_indices = @transform_4, window_bounds = array<i64: 2, 80>}]} {
    %c0 = arith.constant 0 : index
    %c0_0 = arith.constant 0 : index
    %0 = vector.load %arg1[%c0, %c0_0] : memref<2x32xf32, #tpu.memory_space<vmem>>, vector<2x32xf32>
    %c0_1 = arith.constant 0 : index
    %c0_2 = arith.constant 0 : index
    %1 = vector.load %arg2[%c0_1, %c0_2] : memref<32x16xf32, #tpu.memory_space<vmem>>, vector<32x16xf32>
    %cst = arith.constant dense<0.000000e+00> : vector<2x16xf32>
    %2 = tpu.matmul %0, %1, %cst {dimension_numbers = #tpu.dot_dimension_numbers<[1], [0], [0], [1], [0, 0, 1, 1], [], []>} : vector<2x32xf32>, vector<32x16xf32>, vector<2x16xf32> -> vector<2x16xf32>
    %c0_3 = arith.constant 0 : index
    %c0_4 = arith.constant 0 : index
    %3 = vector.load %arg3[%c0_3, %c0_4] : memref<1x16xf32, #tpu.memory_space<vmem>>, vector<1x16xf32>
    %4 = vector.broadcast %3 : vector<1x16xf32> to vector<2x16xf32>
    %5 = arith.addf %2, %4 : vector<2x16xf32>
    %6 = arith.negf %5 : vector<2x16xf32>
    %7 = math.exp %6 : vector<2x16xf32>
    %cst_5 = arith.constant 1.000000e+00 : f32
    %8 = vector.broadcast %cst_5 : f32 to vector<2x16xf32>
    %9 = arith.addf %8, %7 : vector<2x16xf32>
    %10 = arith.divf %8, %9 : vector<2x16xf32>
    %11 = vector.extract_strided_slice %10 {offsets = [0, 0], sizes = [2, 4], strides = [1, 1]} : vector<2x16xf32> to vector<2x4xf32>
    %12 = vector.extract_strided_slice %10 {offsets = [0, 4], sizes = [2, 4], strides = [1, 1]} : vector<2x16xf32> to vector<2x4xf32>
    %13 = vector.extract_strided_slice %10 {offsets = [0, 8], sizes = [2, 4], strides = [1, 1]} : vector<2x16xf32> to vector<2x4xf32>
    %14 = vector.extract_strided_slice %10 {offsets = [0, 12], sizes = [2, 4], strides = [1, 1]} : vector<2x16xf32> to vector<2x4xf32>
    %15 = tpu.concatenate %11, %11, %11, %11, %11, %12, %12, %12, %12, %12, %13, %13, %13, %13, %13, %14 in 1 : vector<2x4xf32>, vector<2x4xf32>, vector<2x4xf32>, vector<2x4xf32>, vector<2x4xf32>, vector<2x4xf32>, vector<2x4xf32>, vector<2x4xf32>, vector<2x4xf32>, vector<2x4xf32>, vector<2x4xf32>, vector<2x4xf32>, vector<2x4xf32>, vector<2x4xf32>, vector<2x4xf32>, vector<2x4xf32> -> vector<2x64xf32>
    %16 = tpu.concatenate %14, %14, %14, %14 in 1 : vector<2x4xf32>, vector<2x4xf32>, vector<2x4xf32>, vector<2x4xf32> -> vector<2x16xf32>
    %17 = tpu.concatenate %15, %16 in 1 : vector<2x64xf32>, vector<2x16xf32> -> vector<2x80xf32>
    %c0_6 = arith.constant 0 : index
    %c0_7 = arith.constant 0 : index
    %18 = vector.load %arg4[%c0_6, %c0_7] : memref<1x80xf32, #tpu.memory_space<vmem>>, vector<1x80xf32>
    %19 = vector.broadcast %18 : vector<1x80xf32> to vector<2x80xf32>
    %20 = arith.mulf %17, %19 : vector<2x80xf32>
    %c0_8 = arith.constant 0 : index
    %c0_9 = arith.constant 0 : index
    %21 = vector.load %arg5[%c0_8, %c0_9] : memref<2x80xf32, #tpu.memory_space<vmem>>, vector<2x80xf32>
    tpu.vector_store %arg5[%c0_8, %c0_9], %20 {strides = array<i32>} : memref<2x80xf32, #tpu.memory_space<vmem>>, vector<2x80xf32>,
    return
  }
  func.func @transform_0(%arg0: i32) -> (i32, i32) {
    %c0_i32 = arith.constant 0 : i32
    %c0_i32_0 = arith.constant 0 : i32
    return %arg0, %c0_i32 : i32, i32
  }
  func.func @transform_1(%arg0: i32) -> (i32, i32) {
    %c0_i32 = arith.constant 0 : i32
    %c0_i32_0 = arith.constant 0 : i32
    %c0_i32_1 = arith.constant 0 : i32
    return %c0_i32, %c0_i32_0 : i32, i32
  }
  func.func @transform_2(%arg0: i32) -> (i32, i32) {
    %c0_i32 = arith.constant 0 : i32
    %c0_i32_0 = arith.constant 0 : i32
    %c0_i32_1 = arith.constant 0 : i32
    return %c0_i32, %c0_i32_0 : i32, i32
  }
  func.func @transform_3(%arg0: i32) -> (i32, i32) {
    %c0_i32 = arith.constant 0 : i32
    %c0_i32_0 = arith.constant 0 : i32
    %c0_i32_1 = arith.constant 0 : i32
    return %c0_i32, %c0_i32_0 : i32, i32
  }
  func.func @transform_4(%arg0: i32) -> (i32, i32) {
    %c0_i32 = arith.constant 0 : i32
    %c0_i32_0 = arith.constant 0 : i32
    return %arg0, %c0_i32 : i32, i32
  }
}

</mosaic_0001>

<bundles_post_ra>
// kernel: tpu_custom_call.1
= control target key start
LH: loop header
LB: loop body
LE: loop exit
PB: predicated region body
PF: predicated region fallthrough
CT: control target
= control target key end

     0   :  { %v292_v3 = vmov 0.0|0.0   ;;  %vm293_vm0 = vmmov 0   ;;  %v294_v6 = vmov 0.0   ;;  %s372_s0 = inlined_call_operand.vmem [shape: f32[2,32], index: 0, kind: input, shape index: {}]   ;;  %s373_s1 = inlined_call_operand.vmem [shape: f32[32,16], index: 1, kind: input, shape index: {}]   ;;  %s374_s2 = inlined_call_operand.vmem [shape: f32[1,16], index: 2, kind: input, shape index: {}]   ;;  %s375_s3 = inlined_call_operand.vmem [shape: f32[1,80], index: 3, kind: input, shape index: {}]   ;;  %s376_s4 = inlined_call_operand.hbm [shape: f32[2,80], index: 4, kind: output, shape index: {}]  }
   0x1   :  { %v19_v0 = vld [vmem:[%s373_s1] sm:$0xff]  ;;  %v20_v1 = vld [vmem:[%s373_s1 + $0x8] sm:$0xff]  ;;  %v21_v2 = vld [vmem:[%s373_s1 + $0x10] sm:$0xff]  ;;  %238 = vmatprep.subr.bf16.mxu0 %v292_v3  ;;  %235 = vmatprep.mubr.msk.f32.mxu0 %vm293_vm0, %v294_v6 }
   0x2   :  { %v239_v4 = vpack.c.bf16 %v20_v1, %v19_v0  ;;  %v22_v5 = vld [vmem:[%s373_s1 + $0x18] sm:$0xff] }
   0x3   :  { %9 = vsyncpa [#allocation3], 0  ;;  %v242_v7 = vpack.c.bf16 %v22_v5, %v21_v2  ;;  %v18_v8 = vld [vmem:[%s372_s0] sm:$0x3]  ;;  %vm30_vm1 = vcmask 261120   ;;  %s295_s1 = smov 124  }
   0x4   :  { %240 = vmatpush3.bf16.msra.mxu0 %v239_v4  ;;  %v218_v9 = vld [vmem:[%s374_s2] ss:$0 sm:$0xff]  ;;  %s296_s27 = smov 116   ;;  %s297_s0 = smov 4   ;;  %vm147_vm2 = vcmask 31744   ;;  %vm149_vm3 = vcmask 64512  }
   0x5   :  { %241 = vmatprep.subr.bf16.mxu0 %v292_v3  ;;  %s298_s28 = smov 120   ;;  %s299_s29 = smov 12   ;;  %vm151_vm4 = vcmask 97280   ;;  %vm153_vm5 = vcmask 130048   ;;  %vm155_vm6 = vcmask 162816   ;;  %vm157_vm7 = vcmask 195584  }
   0x6   :  { %s300_s2 = smov 8   ;;  %s301_s30 = smov 20   ;;  %vm159_vm8 = vcmask 228352   ;;  %vm162_vm9 = vcmask 293888   ;;  %vm164_vm10 = vcmask 326656   ;;  %vm166_vm11 = vcmask 359424  }
   0x7   :  { %s302_s5 = smov 16   ;;  %s303_s6 = smov 28   ;;  %vm168_vm12 = vcmask 392192   ;;  %vm170_vm13 = vcmask 424960   ;;  %vm172_vm14 = vcmask 457728   ;;  %vm174_vm15 = vcmask 490496  }
   0x8   :  { %243 = vmatpush3.bf16.msra.mxu0 %v242_v7  ;;  %s304_s7 = smov 24   ;;  %s305_s8 = smov 36   ;;  %vm192_vm0 = vcmask 523264   ;;  %v221_v49 = vld [vmem:[%s375_s3] ss:$0 sm:$0xff] }
   0x9   :  { %s306_s9 = smov 32   ;;  %s307_s10 = smov 44  }
   0xa   :  { %s308_s11 = smov 40   ;;  %s309_s12 = smov 48  }
   0xb   :  { %236 = vmatmul.mubr.msk.f32.vlgmr.msra.gmra.mrb[0].mxu0 %vm30_vm1, %v18_v8  ;;  %s310_s13 = smov 64   ;;  %s311_s16 = smov [#allocation2]  }
   0xc   :  { %s210_s17 = sshll.u32 %s311_s16, 4  ;;  %s211_s17 = int_to_ptr.vmem [resolvable:$true] %s210_s17 }
   0xd   :  { %s268_s18 = scalar_lea.vmem %s211_s17, 32  ;;  %p273_p1 = scmp.lt.s32.totalorder %s211_s17, %s211_s17 }
   0xe   :  { %p269_p0 = scmp.ne.s32.totalorder %s211_s17, %s268_s18  ;;  %p274_p2 = scmp.lt.s32.totalorder %s268_s18, %s268_s18 }
  0x10   :  { %p275_p3 = por %p274_p2, %p273_p1 }
  0x12   :  { %p276_p4 = pnand %p275_p3, %p269_p0 }
  0xde   :  { %v100_v10 = vpop.f32.mrb[0].mxu0 }
  0xdf   :  { %v101_v11 = vadd.f32 %v218_v9, %v100_v10  ;;  %v237_v12 = vpop.f32.mrb[1].mxu0 }
  0xe1   :  { %v220_v13 = vmul.f32 -1.442695, %v101_v11 }
  0xe3   :  { %264 = vpow2.f32 %v220_v13 }
  0xed   :  { %v265_v14 = vpop.eup %264 }
  0xee   :  { %v107_v15 = vadd.f32 1.0, %v265_v14 }
  0xf0   :  { %266 = vrcp.f32 %v107_v15 }
  0xfa   :  { %v267_v16 = vpop.eup %266 }
  0xfb   :  { %182 = vrot.lane.b32.xlu1 %v267_v16, %s295_s1  ;;  %176 = vrot.lane.b32.xlu0 %v267_v16, %s296_s27 }
  0xff   :  { %111 = vrot.lane.b32.xlu1 %v267_v16, %s297_s0  ;;  %179 = vrot.lane.b32.xlu0 %v267_v16, %s298_s28 }
 0x103   :  { %117 = vrot.lane.b32.xlu1 %v267_v16, %s299_s29  ;;  %114 = vrot.lane.b32.xlu0 %v267_v16, %s300_s2 }
 0x107   :  { %123 = vrot.lane.b32.xlu1 %v267_v16, %s301_s30  ;;  %120 = vrot.lane.b32.xlu0 %v267_v16, %s302_s5 }
 0x10b   :  { %129 = vrot.lane.b32.xlu1 %v267_v16, %s303_s6  ;;  %126 = vrot.lane.b32.xlu0 %v267_v16, %s304_s7 }
 0x10f   :  { %135 = vrot.lane.b32.xlu1 %v267_v16, %s305_s8  ;;  %132 = vrot.lane.b32.xlu0 %v267_v16, %s306_s9 }
 0x113   :  { %141 = vrot.lane.b32.xlu1 %v267_v16, %s307_s10  ;;  %138 = vrot.lane.b32.xlu0 %v267_v16, %s308_s11 }
 0x117   :  { %144 = vrot.lane.b32.xlu0 %v267_v16, %s309_s12 }
 0x16d   :  { %v183_v17 = vpop.permute.xlu1 %182  ;;  %v177_v18 = vpop.permute.xlu0 %176 }
 0x171   :  { %v112_v19 = vpop.permute.xlu1 %111  ;;  %v180_v20 = vpop.permute.xlu0 %179 }
 0x172   :  { %v185_v21 = vsel %vm147_vm2, %v177_v18, %v180_v20  ;;  %v148_v24 = vsel %vm147_vm2, %v267_v16, %v112_v19 }
 0x173   :  { %v186_v22 = vsel %vm149_vm3, %v185_v21, %v183_v17 }
 0x174   :  { %v187_v23 = vsel %vm151_vm4, %v186_v22, %v267_v16 }
 0x175   :  { %v118_v25 = vpop.permute.xlu1 %117  ;;  %189 = vrot.lane.b32.xlu1 %v187_v23, %s310_s13  ;;  %v115_v26 = vpop.permute.xlu0 %114 }
 0x176   :  { %v150_v27 = vsel %vm149_vm3, %v148_v24, %v115_v26 }
 0x177   :  { %v152_v28 = vsel %vm151_vm4, %v150_v27, %v118_v25 }
 0x179   :  { %v121_v29 = vpop.permute.xlu0 %120  ;;  %v124_v31 = vpop.permute.xlu1 %123 }
 0x17a   :  { %v154_v30 = vsel %vm153_vm5, %v152_v28, %v121_v29 }
 0x17b   :  { %v156_v32 = vsel %vm155_vm6, %v154_v30, %v121_v29 }
 0x17c   :  { %v158_v34 = vsel %vm157_vm7, %v156_v32, %v124_v31 }
 0x17d   :  { %v127_v33 = vpop.permute.xlu0 %126  ;;  %v130_v35 = vpop.permute.xlu1 %129 }
 0x17e   :  { %v160_v36 = vsel %vm159_vm8, %v158_v34, %v127_v33 }
 0x17f   :  { %v161_v38 = vsel %vm30_vm1, %v160_v36, %v130_v35  ;;  %vm202_vm1 = vcmask 648192  }
 0x181   :  { %v133_v37 = vpop.permute.xlu0 %132  ;;  %v136_v40 = vpop.permute.xlu1 %135 }
 0x182   :  { %v163_v39 = vsel %vm162_vm9, %v161_v38, %v133_v37 }
 0x183   :  { %v165_v41 = vsel %vm164_vm10, %v163_v39, %v133_v37 }
 0x184   :  { %v167_v43 = vsel %vm166_vm11, %v165_v41, %v136_v40 }
 0x185   :  { %v139_v42 = vpop.permute.xlu0 %138  ;;  %v142_v44 = vpop.permute.xlu1 %141 }
 0x186   :  { %v169_v45 = vsel %vm168_vm12, %v167_v43, %v139_v42 }
 0x187   :  { %v171_v47 = vsel %vm170_vm13, %v169_v45, %v142_v44 }
 0x189   :  { %v145_v46 = vpop.permute.xlu0 %144 }
 0x18a   :  { %v173_v48 = vsel %vm172_vm14, %v171_v47, %v145_v46 }
 0x18b   :  { %v175_v50 = vsel %vm174_vm15, %v173_v48, %v145_v46 }
 0x1e7   :  { %v190_v51 = vpop.permute.xlu1 %189 }
 0x1e8   :  { %v193_v52 = vsel %vm192_vm0, %v175_v50, %v190_v51 }
 0x1e9   :  { %v201_v53 = vmul.f32 %v221_v49, %v193_v52 }
 0x1eb   :  { %203 = vst.msk [vmem:[#allocation2] sm:$0x3] %vm202_vm1, %v201_v53 }
 0x1ec   :  { %279 = shalt.err (!%p276_p4)
}
 0x1ed   :  { %s280_s3 = scalar_lea.hbm %s376_s4, 32 }
 0x1ee   :  { %p281_p5 = scmp.ne.s32.totalorder %s376_s4, %s280_s3  ;;  %p284_p6 = scmp.lt.u32.totalorder %s280_s3, %s376_s4 }
 0x1f0   :  { %p286_p7 = pnand %p284_p6, %p281_p5 }
 0x1f2   :  { %289 = shalt.err (!%p286_p7)
}
 0x1f3   :  { %213 = dma.vmem_to_hbm [thread:$0]  %s211_s17, 32, %s376_s4, [#allocation3]  }
 0x1f4   :  { %290 = dma.done.wait [#allocation3], 32  }
 0x1f5   :  { %291 = vsyncadd [#allocation3], 4294967264 }
 0x1f6   :  { %217 = vsyncpa [#allocation3], 1 }

</bundles_post_ra>
